<compile_context>
chip_gen: v7x
topology: tpu7x:2x2x1
jax: 0.10.0
libtpu: 0.0.40
codegen_flags: <defaults>
</compile_context>

<pallas_src>
import jax
import jax.numpy as jnp
from jax import lax
from jax.experimental import pallas as pl
from jax.experimental.pallas import tpu as pltpu


def _vmem_plan():
    """Returns (slab_budget_bytes, vmem_limit_bytes, split_for_two_cores)."""
    cap = 0
    try:
        cap = int(getattr(pltpu.get_tpu_info(), "vmem_capacity_bytes", 0))
    except Exception:
        cap = 0
    if cap >= 100 * 1024 * 1024:
        # v5e / v6e class: 128 MiB VMEM, single TensorCore -> big tiles,
        # no need to keep the grid >= 2.
        return 88 * 1024 * 1024, 100 * 1024 * 1024, False
    # v7x class (64 MiB per TC, 2 TCs) or unknown: conservative budget with
    # ~20 MiB headroom above the I/O slabs, and keep grid >= 2 so the batch
    # axis shards across both TensorCores.
    return 36 * 1024 * 1024, 56 * 1024 * 1024, True


def _se_kernel(x_ref, w1_ref, w2_ref, o_ref):
    # x_ref / o_ref: (TB, C, HW)
    # w1_ref: (C_red_pad, C)   zero-padded torch fc[0].weight (no bias)
    # w2_ref: (C, C_red_pad)   zero-padded torch fc[2].weight (no bias)
    hw = x_ref.shape[-1]
    x = x_ref[...]                                        # stays in input dtype

    # Squeeze: global average pool; accumulate in f32 but keep no full-tile
    # f32 temporary live past this reduction.
    pooled = jnp.sum(x, axis=2, dtype=jnp.float32) * (1.0 / hw)      # (TB, C)

    w1 = w1_ref[...].astype(jnp.float32)                  # (C_red_pad, C)
    w2 = w2_ref[...].astype(jnp.float32)                  # (C, C_red_pad)

    # Excite: y = sigmoid(relu(pooled @ W1^T) @ W2^T), f32 accumulation.
    h = lax.dot_general(pooled, w1, (((1,), (1,)), ((), ())),
                        preferred_element_type=jnp.float32)          # (TB, C_red_pad)
    h = jnp.maximum(h, 0.0)
    y = lax.dot_general(h, w2, (((1,), (1,)), ((), ())),
                        preferred_element_type=jnp.float32)          # (TB, C)
    y = jax.nn.sigmoid(y)

    # Scale in the input dtype: no f32 tile temp, no f32->bf16 pack on store.
    o_ref[...] = x * y.astype(x.dtype)[:, :, None]


def se_layer(x_nchw, w1, w2):
    """SELayer forward.  x_nchw: (B, C, H, W); w1: (C//r, C); w2: (C, C//r)."""
    B, C, H, W = x_nchw.shape
    HW = H * W
    C_red = w1.shape[0]
    assert w1.shape == (C_red, C) and w2.shape == (C, C_red)

    # Natural (B, C, HW) layout; reshape is free (contiguous), no transposes.
    x3 = x_nchw.reshape(B, C, HW)

    # Zero-pad the reduced channel dim to a lane-dense multiple of 128.
    cred_pad = ((C_red + 127) // 128) * 128
    if cred_pad != C_red:
        w1 = jnp.pad(w1, ((0, cred_pad - C_red), (0, 0)))
        w2 = jnp.pad(w2, ((0, 0), (0, cred_pad - C_red)))

    slab_budget, vmem_limit, split_two_cores = _vmem_plan()

    itemsize = jnp.dtype(x3.dtype).itemsize
    # Per-element VMEM cost: in + out double-buffered (4 * itemsize) plus the
    # transient f32 operand of the pooling reduction (4 bytes), so bf16 inputs
    # are budgeted correctly even if the convert materializes.
    bytes_per_elem = 4 * itemsize + 4
    tb = max(1, slab_budget // (bytes_per_elem * C * HW))
    tb = min(tb, B)
    if split_two_cores and B >= 2:
        tb = min(tb, pl.cdiv(B, 2))        # grid >= 2 so both TensorCores work
    grid = (pl.cdiv(B, tb),)               # partial last block is fine: padded
                                           # batch rows pool independently and
                                           # their outputs are dropped.
    # TODO(synk): if a single (C, HW) slab ever exceeds the VMEM budget, add an
    # HW-chunk "arbitrary" grid axis with a pl.when-initialized accumulator.

    blk = (tb, C, HW)
    w_bytes = (w1.size * jnp.dtype(w1.dtype).itemsize
               + w2.size * jnp.dtype(w2.dtype).itemsize)
    cost = pl.CostEstimate(
        flops=int(2 * B * C * HW + 4 * B * C * cred_pad),
        transcendentals=int(B * C),
        bytes_accessed=int(2 * B * C * HW * itemsize + w_bytes),
    )

    out3 = pl.pallas_call(
        _se_kernel,
        out_shape=jax.ShapeDtypeStruct(x3.shape, x3.dtype),
        grid_spec=pltpu.PrefetchScalarGridSpec(
            num_scalar_prefetch=0,
            grid=grid,
            in_specs=[
                pl.BlockSpec(blk, lambda b: (b, 0, 0)),
                pl.BlockSpec(w1.shape, lambda b: (0, 0)),
                pl.BlockSpec(w2.shape, lambda b: (0, 0)),
            ],
            out_specs=pl.BlockSpec(blk, lambda b: (b, 0, 0)),
        ),
        compiler_params=pltpu.CompilerParams(
            dimension_semantics=("parallel",),
            vmem_limit_bytes=vmem_limit),
        cost_estimate=cost,
    )(x3, w1, w2)

    return out3.reshape(B, C, H, W)


def se_layer_ref(x_nchw, w1, w2):
    """Pure-JAX reference mirroring torch SELayer.forward (f32 math)."""
    xf = x_nchw.astype(jnp.float32)
    pooled = jnp.mean(xf, axis=(2, 3))                       # (B, C)
    h = jnp.maximum(pooled @ w1.T.astype(jnp.float32), 0.0)  # (B, C_red)
    y = jax.nn.sigmoid(h @ w2.T.astype(jnp.float32))         # (B, C)
    return xf * y[:, :, None, None]


if __name__ == "__main__":
    key = jax.random.PRNGKey(0)
    reduction = 16

    # Case 1: small lane-dense feature map (HW = 256), f32 and bf16 I/O.
    B, C, H, W = 2, 64, 16, 16
    C_red = C // reduction
    kx, k1, k2, key = jax.random.split(key, 4)
    x = jax.random.normal(kx, (B, C, H, W), dtype=jnp.float32)
    w1 = jax.random.normal(k1, (C_red, C), dtype=jnp.float32) * 0.1   # fc[0].weight
    w2 = jax.random.normal(k2, (C, C_red), dtype=jnp.float32) * 0.1   # fc[2].weight

    out = jax.block_until_ready(se_layer(x, w1, w2))
    ref = se_layer_ref(x, w1, w2)
    assert out.shape == (B, C, H, W)
    assert jnp.allclose(out, ref, atol=1e-4, rtol=1e-4), "f32 mismatch vs reference"

    out_bf = jax.block_until_ready(se_layer(x.astype(jnp.bfloat16), w1, w2))
    assert out_bf.dtype == jnp.bfloat16
    assert jnp.allclose(out_bf.astype(jnp.float32), ref, atol=3e-2, rtol=3e-2), \
        "bf16 mismatch vs reference"

    # Case 2: typical SE feature map (7x7 spatial, C=128) kept in (B, C, HW)
    # layout (HW = 49 is not lane-dense; no wrapper transposes).  B = 3 also
    # exercises the partial-last-block path when the grid is split.
    B2, C2, H2, W2 = 3, 128, 7, 7
    C2_red = C2 // reduction
    kx2, k12, k22, key = jax.random.split(key, 4)
    x2 = jax.random.normal(kx2, (B2, C2, H2, W2), dtype=jnp.float32)
    w12 = jax.random.normal(k12, (C2_red, C2), dtype=jnp.float32) * 0.1
    w22 = jax.random.normal(k22, (C2, C2_red), dtype=jnp.float32) * 0.1
    out2 = jax.block_until_ready(se_layer(x2, w12, w22))
    ref2 = se_layer_ref(x2, w12, w22)
    assert jnp.allclose(out2, ref2, atol=1e-4, rtol=1e-4), "7x7 case mismatch"

    print("KERNEL_OK")
</pallas_src>

<mosaic_0001>
module attributes {stable_mosaic.version = 11 : i64} {
  func.func @_se_kernel(%arg0: i32, %arg1: memref<1x64x256xf32, #tpu.memory_space<vmem>>, %arg2: memref<128x64xf32, #tpu.memory_space<vmem>>, %arg3: memref<64x128xf32, #tpu.memory_space<vmem>>, %arg4: memref<1x64x256xf32, #tpu.memory_space<vmem>>) attributes {dimension_semantics = [#tpu.dimension_semantics<parallel>], iteration_bounds = array<i64: 2>, scalar_prefetch = 0 : i64, scratch_operands = 0 : i64, tpu.core_type = #tpu.core_type<tc>, window_params = [{transform_indices = @transform_0, window_bounds = array<i64: 1, 64, 256>}, {pipeline_mode = #tpu.pipeline_mode<synchronous>, transform_indices = @transform_1, window_bounds = array<i64: 128, 64>}, {pipeline_mode = #tpu.pipeline_mode<synchronous>, transform_indices = @transform_2, window_bounds = array<i64: 64, 128>}, {transform_indices = @transform_3, window_bounds = array<i64: 1, 64, 256>}]} {
    %c0 = arith.constant 0 : index
    %c0_0 = arith.constant 0 : index
    %c0_1 = arith.constant 0 : index
    %0 = vector.load %arg1[%c0, %c0_0, %c0_1] : memref<1x64x256xf32, #tpu.memory_space<vmem>>, vector<1x64x256xf32>
    %cst = arith.constant dense<0.000000e+00> : vector<1x64xf32>
    %1 = vector.multi_reduction <add>, %0, %cst [2] : vector<1x64x256xf32> to vector<1x64xf32>
    %cst_2 = arith.constant 3.906250e-03 : f32
    %2 = vector.broadcast %cst_2 : f32 to vector<1x64xf32>
    %3 = arith.mulf %1, %2 : vector<1x64xf32>
    %c0_3 = arith.constant 0 : index
    %c0_4 = arith.constant 0 : index
    %4 = vector.load %arg2[%c0_3, %c0_4] : memref<128x64xf32, #tpu.memory_space<vmem>>, vector<128x64xf32>
    %c0_5 = arith.constant 0 : index
    %c0_6 = arith.constant 0 : index
    %5 = vector.load %arg3[%c0_5, %c0_6] : memref<64x128xf32, #tpu.memory_space<vmem>>, vector<64x128xf32>
    %cst_7 = arith.constant dense<0.000000e+00> : vector<1x128xf32>
    %6 = tpu.matmul %3, %4, %cst_7 {dimension_numbers = #tpu.dot_dimension_numbers<[1], [1], [0], [0], [0, 0, 1, 0], [], []>} : vector<1x64xf32>, vector<128x64xf32>, vector<1x128xf32> -> vector<1x128xf32>
    %cst_8 = arith.constant 0.000000e+00 : f32
    %7 = vector.broadcast %cst_8 : f32 to vector<1x128xf32>
    %8 = arith.maximumf %6, %7 : vector<1x128xf32>
    %cst_9 = arith.constant dense<0.000000e+00> : vector<1x64xf32>
    %9 = tpu.matmul %8, %5, %cst_9 {dimension_numbers = #tpu.dot_dimension_numbers<[1], [1], [0], [0], [0, 0, 1, 0], [], []>} : vector<1x128xf32>, vector<64x128xf32>, vector<1x64xf32> -> vector<1x64xf32>
    %10 = arith.negf %9 : vector<1x64xf32>
    %11 = math.exp %10 : vector<1x64xf32>
    %cst_10 = arith.constant 1.000000e+00 : f32
    %12 = vector.broadcast %cst_10 : f32 to vector<1x64xf32>
    %13 = arith.addf %12, %11 : vector<1x64xf32>
    %14 = arith.divf %12, %13 : vector<1x64xf32>
    %15 = vector.shape_cast %14 : vector<1x64xf32> to vector<1x64x1xf32>
    %16 = vector.broadcast %15 : vector<1x64x1xf32> to vector<1x64x256xf32>
    %17 = arith.mulf %0, %16 : vector<1x64x256xf32>
    %c0_11 = arith.constant 0 : index
    %c0_12 = arith.constant 0 : index
    %c0_13 = arith.constant 0 : index
    %18 = vector.load %arg4[%c0_11, %c0_12, %c0_13] : memref<1x64x256xf32, #tpu.memory_space<vmem>>, vector<1x64x256xf32>
    tpu.vector_store %arg4[%c0_11, %c0_12, %c0_13], %17 {strides = array<i32>} : memref<1x64x256xf32, #tpu.memory_space<vmem>>, vector<1x64x256xf32>,
    return
  }
  func.func @transform_0(%arg0: i32) -> (i32, i32, i32) {
    %c0_i32 = arith.constant 0 : i32
    %c0_i32_0 = arith.constant 0 : i32
    %c0_i32_1 = arith.constant 0 : i32
    return %arg0, %c0_i32, %c0_i32_0 : i32, i32, i32
  }
  func.func @transform_1(%arg0: i32) -> (i32, i32) {
    %c0_i32 = arith.constant 0 : i32
    %c0_i32_0 = arith.constant 0 : i32
    %c0_i32_1 = arith.constant 0 : i32
    return %c0_i32, %c0_i32_0 : i32, i32
  }
  func.func @transform_2(%arg0: i32) -> (i32, i32) {
    %c0_i32 = arith.constant 0 : i32
    %c0_i32_0 = arith.constant 0 : i32
    %c0_i32_1 = arith.constant 0 : i32
    return %c0_i32, %c0_i32_0 : i32, i32
  }
  func.func @transform_3(%arg0: i32) -> (i32, i32, i32) {
    %c0_i32 = arith.constant 0 : i32
    %c0_i32_0 = arith.constant 0 : i32
    %c0_i32_1 = arith.constant 0 : i32
    return %arg0, %c0_i32, %c0_i32_0 : i32, i32, i32
  }
}

</mosaic_0001>

<bundles_post_ra>
// kernel: tpu_custom_call.1
= control target key start
LH: loop header
LB: loop body
LE: loop exit
PB: predicated region body
PF: predicated region fallthrough
CT: control target
= control target key end

     0   :  { %8 = vsyncpa [#allocation3], 0  ;;  %s1404_s0 = inlined_call_operand.hbm [shape: f32[2,64,256], index: 0, kind: input, shape index: {}]   ;;  %s1405_s1 = inlined_call_operand.vmem [shape: f32[128,64], index: 1, kind: input, shape index: {}]   ;;  %s1406_s2 = inlined_call_operand.vmem [shape: f32[64,128], index: 2, kind: input, shape index: {}]   ;;  %s1407_s3 = inlined_call_operand.hbm [shape: f32[2,64,256], index: 3, kind: output, shape index: {}]  }
   0x1   :  { %10 = vsyncpa [#allocation3 + $0x1], 0 }
   0x2   :  { %11 = vsyncpa [#allocation4], 0 }
   0x3   :  { %13 = vsyncpa [#allocation4 + $0x1], 0  ;;  %s1018_s12 = smov 0   ;;  %s1020_s13 = smov 0  }
   0x4   :  { %s1022_s14 = smov 0   ;;  %s1024_s15 = smov 0  }
   0x5 LB: > { %s1039_s16 = sadd.s32 4294967295, %s987_s15   ;;  %s676_s17 = sadd.s32 4294967294, %s987_s15   ;;  %s987_s15 = sphi %s1024_s15, %s1422_s15   ;;  %s983_s14 = sphi %s1022_s14, %s1421_s14   ;;  %s979_s13 = sphi %s1020_s13, %s1420_s13   ;;  %s975_s12 = sphi %s1018_s12, %s1419_s12  }
   0x6   : > { %s1043_s18 = sadd.s32 1, %s987_s15   ;;  %s26_s19 = sadd.s32 1, %s983_s14 }
   0x7   : > { %s23_s20 = ssub.s32 %s987_s15, %s1043_s18  ;;  %p33_p0 = scmp.ne.s32.totalorder %s983_s14, %s979_s13 }
   0x8   : > { %p24_p1 = scmp.eq.s32.totalorder %s23_s20, 0  ;;  %p34_p2 = scmp.eq.s32.totalorder %s987_s15, 0 }
   0x9   : > { %p39_p3 = scmp.ne.s32.totalorder %s979_s13, %s975_s12  ;;  %p40_p4 = scmp.eq.s32.totalorder %s1039_s16, 0 }
   0xa   : > { %s1055_s21 = scalar_select %p24_p1, %s983_s14, %s26_s19  }
   0xb   : > { %p1057_p5 = por %p34_p2, %p33_p0  ;;  %p1061_p6 = por %p40_p4, %p39_p3 }
   0xc   : > { %p105_p7 = scmp.eq.s32.totalorder %s1039_s16, 1  ;;  %p111_p8 = scmp.eq.s32.totalorder %s676_s17, 1 }
   0xd   : > { %p846_p10 = scmp.lt.s32.totalorder %s987_s15, 2  ;;  %s137_s26 = sand.u32 1, %s983_s14  }
   0xe   : > { %p1068_p11 = por %p105_p7, %p33_p0  ;;  %p1072_p12 = por %p111_p8, %p39_p3 }
   0xf   : > { %s708_s27 = sshll.u32 %s987_s15, 11  ;;  %s679_s28 = sshll.u32 %s137_s26, 7 }
  0x10   : > { %s1411_s24 = scalar_select %p1068_p11, 1, 0 }
  0x11   : > { %s1412_s25 = scalar_select %p1072_p12, 1, 0 }
  0x12   : > { %s1081_s4 = scalar_lea.hbm %s1404_s0, %s708_s27  ;;  %s141_s5 = scalar_lea.vmem [#allocation2], %s679_s28 }
  0x13   : > { %s148_s6 = sshll.u32 %s141_s5, 4  ;;  %p1085_p13 = pnand %p846_p10, %p1057_p5  ;;  %s1089_s6 = int_to_ptr.vmem [resolvable:$true] %s148_s6 }
  0x14   : > { %s1091_s8 = scalar_lea.sflag [#allocation3], %s137_s26  ;;  %s891_s9 = scalar_lea.hbm %s1081_s4, 2048 }
  0x15   : > { %p892_p0 = scmp.ne.s32.totalorder %s1081_s4, %s891_s9  ;;  %p893_p1 = pneg %p1085_p13 }
  0x16   : > { %s896_s17 = scalar_lea.hbm %s1404_s0, 4096  ;;  %p897_p4 = scmp.lt.u32.totalorder %s1081_s4, %s1404_s0 }
  0x17   : > { %p894_p2 = pnand %p893_p1, %p892_p0  ;;  %p898_p5 = scmp.lt.u32.totalorder %s896_s17, %s891_s9 }
  0x18   : > { %p900_p8 = scmp.lt.u32.totalorder %s891_s9, %s1081_s4 }
  0x19   : > { %p895_p3 = pneg %p894_p2  ;;  %p899_p7 = por %p898_p5, %p897_p4 }
  0x1b   : > { %p901_p10 = por %p900_p8, %p899_p7 }
  0x1d   : > { %p902_p9 = pnand %p901_p10, %p895_p3 }
  0x1f   : > { %905 = shalt.err (!%p902_p9)
}
  0x20   : > { %s906_s22 = scalar_lea.vmem %s1089_s6, 2048  ;;  %s989_s26 = smov [#allocation2]  }
  0x21   : > { %p907_p0 = scmp.ne.s32.totalorder %s1089_s6, %s906_s22  ;;  %s911_s27 = sshll.u32 %s989_s26, 4  ;;  %s912_s27 = int_to_ptr.vmem [resolvable:$false] %s911_s27 }
  0x22   : > { %s913_s28 = scalar_lea.vmem %s912_s27, 4096  ;;  %p914_p11 = scmp.lt.s32.totalorder %s1089_s6, %s912_s27 }
  0x23   : > { %p909_p2 = pnand %p907_p0, %p893_p1  ;;  %p915_p4 = scmp.lt.s32.totalorder %s913_s28, %s906_s22 }
  0x25   : > { %p910_p12 = pneg %p909_p2  ;;  %p916_p5 = por %p915_p4, %p914_p11 }
  0x27   : > { %p917_p7 = pnand %p916_p5, %p910_p12 }
  0x29   : > { %920 = shalt.err (!%p917_p7)
}
  0x2a   : > { %s990_s29 = smov 256   ;;  %s991_s30 = smov 16  }
  0x2b   : > { %841 = dma.hbm_to_vmem [thread:$0]  (!%p1085_p13), %s1081_s4, 2048, %s1089_s6, %s1091_s8, %s990_s29, %s990_s29, %s991_s30  }
  0x2c   : > { %p682_p9 = scmp.ge.s32.totalorder %s987_s15, 1  ;;  %p156_p1 = scmp.lt.s32.totalorder %s987_s15, 3 }
  0x2e   : > { %p157_p3 = pnand %p682_p9, %p156_p1 }
  0x2f   : > { %s1122_s5 = sand.u32 (!%p157_p3), 1, %s979_s13  }
  0x30   : > { %160 = sbr.rel (%p157_p3) target bundleno = 821 (0x335), region = 32  ;;  %s683_s9 = sshll.u32 (!%p157_p3), %s1122_s5, 7 }
  0x31   : > { %s163_s10 = scalar_lea.sflag (!%p157_p3), [#allocation3], %s1122_s5  ;;  %s1128_s11 = scalar_lea.vmem (!%p157_p3), [#allocation2], %s683_s9 }
  0x37   : > { %966 = dma.done.wait (%p1061_p6), %s163_s10, 2048  }
  0x38   : > { %968 = vsyncadd (%p1061_p6), %s163_s10, 4294965248  ;;  %v992_v0 = vmov 0.0|0.0   ;;  %v1137_v1 = vld [vmem:[%s1128_s11] sm:$0xff]  ;;  %v1140_v2 = vld [vmem:[%s1128_s11 + $0x8] sm:$0xff]  ;;  %vm324_vm0 = vcmask 523264   ;;  %vm993_vm2 = vmmov 0   ;;  %v269_v63 = vlaneseq }
  0x39   : > { %790 = vmatprep.subr.bf16.mxu0 %v992_v0  ;;  %822 = vmatprep.subr.bf16.mxu1 %v992_v0  ;;  %v1143_v3 = vld [vmem:[%s1128_s11 + $0x20] sm:$0xff]  ;;  %v205_v4 = vadd.f32 %v1140_v2, %v1137_v1  ;;  %v1148_v5 = vld [vmem:[%s1128_s11 + $0x28] sm:$0xff]  ;;  %v1151_v6 = vld [vmem:[%s1128_s11 + $0x10] sm:$0xff]  ;;  %v994_v40 = vmov 0.0   ;;  %vm280_vm3 = vcmask 130112   ;;  %vm287_vm4 = vcmask 195712  }
  0x3a   : > { %v1154_v7 = vld [vmem:[%s1128_s11 + $0x18] sm:$0xff]  ;;  %v211_v8 = vadd.f32 %v1148_v5, %v1143_v3  ;;  %v1159_v9 = vld [vmem:[%s1128_s11 + $0x30] sm:$0xff]  ;;  %vm1168_vm1 = vmpackc.low %vm324_vm0, %vm324_vm0  ;;  %768 = vmatprep.mubr.msk.f32.mxu0 %vm993_vm2, %v994_v40  ;;  %787 = vmatprep.mubr.msk.f32.mxu1 %vm993_vm2, %v994_v40  ;;  %vm294_vm5 = vcmask 261312   ;;  %vm301_vm6 = vcmask 326912   ;;  %vm308_vm7 = vcmask 392512   ;;  %s1323_s23 = scalar_lea.vmem [#allocation5], %s683_s9 }
  0x3b   : > { %v1162_v10 = vld [vmem:[%s1128_s11 + $0x38] sm:$0xff]  ;;  %206 = vadd.xlane.f32.xlu0 %v205_v4  ;;  %v208_v11 = vadd.f32 %v1154_v7, %v1151_v6  ;;  %v1175_v14 = vld [vmem:[%s1128_s11 + $0x40] sm:$0xff]  ;;  %v1178_v15 = vld [vmem:[%s1128_s11 + $0x48] sm:$0xff]  ;;  %v270_v4 = vand.u32 127, %v269_v63  ;;  %vm315_vm8 = vcmask 458112   ;;  %vm322_vm9 = vcmask 523712  }
  0x3c   : > { %212 = vadd.xlane.f32.xlu1 %v211_v8  ;;  %v214_v13 = vadd.f32 %v1162_v10, %v1159_v9  ;;  %v1181_v16 = vld [vmem:[%s1128_s11 + $0x50] sm:$0xff]  ;;  %v1184_v17 = vld [vmem:[%s1128_s11 + $0x58] sm:$0xff]  ;;  %v237_v18 = vld [vmem:[%s1405_s1] sm:$0xff]  ;;  %v217_v21 = vadd.f32 %v1178_v15, %v1175_v14  ;;  %v1304_v8 = vshrl.u32 %v269_v63, 7  ;;  %s709_s9 = sshll.u32 %s1039_s16, 11  ;;  %s603_s4 = sshll.u32 %s1323_s23, 4  ;;  %s1356_s4 = int_to_ptr.vmem [resolvable:$true] %s603_s4 }
  0x3d   : > { %v238_v19 = vld [vmem:[%s1405_s1 + $0x8] sm:$0xff]  ;;  %v220_v22 = vadd.f32 %v1184_v17, %v1181_v16  ;;  %v1197_v23 = vld [vmem:[%s1128_s11 + $0x60] sm:$0xff]  ;;  %v1203_v25 = vld [vmem:[%s1128_s11 + $0x70] sm:$0xff]  ;;  %s1354_s8 = scalar_lea.hbm %s1407_s3, %s709_s9  ;;  %s590_s16 = scalar_lea.sflag [#allocation4], %s1122_s5 }
  0x3e   : > { %v791_v20 = vpack.c.bf16 %v238_v19, %v237_v18  ;;  %v1200_v24 = vld [vmem:[%s1128_s11 + $0x68] sm:$0xff]  ;;  %v1208_v26 = vld [vmem:[%s1128_s11 + $0x78] sm:$0xff]  ;;  %v239_v27 = vld [vmem:[%s1405_s1 + $0x10] sm:$0xff]  ;;  %v289_v18 = vadd.s32 4294967272, %v270_v4  ;;  %s921_s17 = scalar_lea.vmem %s1356_s4, 2048  ;;  %p1416_p11 = scmp.ne.s32.totalorder %s1411_s24, 0 }
  0x3f   : > { %209 = vadd.xlane.f32.xlu0 %v208_v11  ;;  %v240_v28 = vld [vmem:[%s1405_s1 + $0x18] sm:$0xff]  ;;  %v223_v29 = vadd.f32 %v1200_v24, %v1197_v23  ;;  %v226_v30 = vadd.f32 %v1208_v26, %v1203_v25  ;;  %v241_v32 = vld [vmem:[%s1405_s1 + $0x20] sm:$0xff]  ;;  %v242_v33 = vld [vmem:[%s1405_s1 + $0x28] sm:$0xff]  ;;  %v275_v11 = vadd.s32 4294967288, %v270_v4  ;;  %p922_p6 = scmp.ne.s32.totalorder %s1356_s4, %s921_s17  ;;  %s995_s19 = smov [#allocation5]  }
  0x40   : > { %215 = vadd.xlane.f32.xlu1 %v214_v13  ;;  %793 = vmatpush3.bf16.xpose.msk.msra.mxu0 %vm1168_vm1, %v791_v20  ;;  %v795_v31 = vpack.c.bf16 %v240_v28, %v239_v27  ;;  %v799_v34 = vpack.c.bf16 %v242_v33, %v241_v32  ;;  %v243_v35 = vld [vmem:[%s1405_s1 + $0x30] sm:$0xff]  ;;  %v244_v36 = vld [vmem:[%s1405_s1 + $0x38] sm:$0xff]  ;;  %v245_v38 = vld [vmem:[%s1405_s1 + $0x40] sm:$0xff]  ;;  %v282_v13 = vadd.s32 4294967280, %v270_v4  ;;  %v273_v20 = vsub.s32 %v270_v4, %v1304_v8  ;;  %s925_s20 = sshll.u32 %s995_s19, 4  ;;  %s926_s20 = int_to_ptr.vmem [resolvable:$false] %s925_s20 }
  0x41   : > { %794 = vmatprep.subr.bf16.mxu0 %v992_v0  ;;  %v803_v37 = vpack.c.bf16 %v244_v36, %v243_v35  ;;  %v246_v39 = vld [vmem:[%s1405_s1 + $0x48] sm:$0xff]  ;;  %v253_v41 = vld [vmem:[%s1406_s2] sm:$0xff]  ;;  %v255_v45 = vld [vmem:[%s1406_s2 + $0x10] sm:$0xff]  ;;  %v296_v27 = vadd.s32 4294967264, %v270_v4  ;;  %p923_p12 = pnand %p922_p6, %p1416_p11  ;;  %s927_s22 = scalar_lea.vmem %s926_s20, 4096 }
  0x42   : > { %v254_v42 = vld [vmem:[%s1406_s2 + $0x8] sm:$0xff]  ;;  %v807_v43 = vpack.c.bf16 %v246_v39, %v245_v38  ;;  %v256_v46 = vld [vmem:[%s1406_s2 + $0x18] sm:$0xff]  ;;  %v247_v47 = vld [vmem:[%s1405_s1 + $0x50] sm:$0xff]  ;;  %v285_v28 = vsub.s32 %v282_v13, %v1304_v8  ;;  %v310_v38 = vadd.s32 4294967248, %v270_v4  ;;  %p928_p8 = scmp.lt.s32.totalorder %s1356_s4, %s926_s20  ;;  %p929_p10 = scmp.lt.s32.totalorder %s927_s22, %s921_s17 }
  0x43   : > { %218 = vadd.xlane.f32.xlu0 %v217_v21  ;;  %v823_v44 = vpack.c.bf16 %v254_v42, %v253_v41  ;;  %v248_v48 = vld [vmem:[%s1405_s1 + $0x58] sm:$0xff]  ;;  %v826_v49 = vpack.c.bf16 %v256_v46, %v255_v45  ;;  %v257_v51 = vld [vmem:[%s1406_s2 + $0x20] sm:$0xff]  ;;  %v258_v52 = vld [vmem:[%s1406_s2 + $0x28] sm:$0xff]  ;;  %p924_p13 = pneg %p923_p12 }
  0x44   : > { %221 = vadd.xlane.f32.xlu1 %v220_v22  ;;  %v811_v50 = vpack.c.bf16 %v248_v48, %v247_v47  ;;  %v249_v53 = vld [vmem:[%s1405_s1 + $0x60] sm:$0xff]  ;;  %v250_v54 = vld [vmem:[%s1405_s1 + $0x68] sm:$0xff]  ;;  %v829_v55 = vpack.c.bf16 %v258_v52, %v257_v51  ;;  %v259_v57 = vld [vmem:[%s1406_s2 + $0x30] sm:$0xff]  ;;  %v278_v22 = vsub.s32 %v275_v11, %v1304_v8  ;;  %v313_v51 = vsub.s32 %v310_v38, %v1304_v8  ;;  %p930_p0 = por %p929_p10, %p928_p8 }
  0x45   : > { %824 = vmatpush3.bf16.xpose.msra.mxu1 %v823_v44  ;;  %v815_v56 = vpack.c.bf16 %v250_v54, %v249_v53  ;;  %v260_v58 = vld [vmem:[%s1406_s2 + $0x38] sm:$0xff]  ;;  %v251_v59 = vld [vmem:[%s1405_s1 + $0x70] sm:$0xff] }
  0x46   : > { %825 = vmatprep.subr.bf16.mxu1 %v992_v0  ;;  %v252_v60 = vld [vmem:[%s1405_s1 + $0x78] sm:$0xff]  ;;  %v832_v61 = vpack.c.bf16 %v260_v58, %v259_v57  ;;  %p931_p2 = pnand %p930_p0, %p924_p13 }
  0x47   : > { %224 = vadd.xlane.f32.xlu0 %v223_v29  ;;  %v819_v62 = vpack.c.bf16 %v252_v60, %v251_v59 }
  0x48   : > { %227 = vadd.xlane.f32.xlu1 %v226_v30  ;;  %797 = vmatpush3.bf16.xpose.msk.msra.mxu0 %vm1168_vm1, %v795_v31  ;;  %v292_v30 = vsub.s32 %v289_v18, %v1304_v8  ;;  %v303_v31 = vadd.s32 4294967256, %v270_v4 }
  0x49   : > { %798 = vmatprep.subr.bf16.mxu0 %v992_v0 }
  0x4a   : > { %v306_v42 = vsub.s32 %v303_v31, %v1304_v8 }
  0x4d   : > { %827 = vmatpush3.bf16.xpose.msra.mxu1 %v826_v49 }
  0x4e   : > { %828 = vmatprep.subr.bf16.mxu1 %v992_v0 }
  0x50   : > { %801 = vmatpush3.bf16.xpose.msk.msra.mxu0 %vm1168_vm1, %v799_v34 }
  0x51   : > { %802 = vmatprep.subr.bf16.mxu0 %v992_v0 }
  0x55   : > { %830 = vmatpush3.bf16.xpose.msra.mxu1 %v829_v55 }
  0x56   : > { %831 = vmatprep.subr.bf16.mxu1 %v992_v0 }
  0x58   : > { %805 = vmatpush3.bf16.xpose.msk.msra.mxu0 %vm1168_vm1, %v803_v37  ;;  %v299_v37 = vsub.s32 %v296_v27, %v1304_v8 }
  0x59   : > { %806 = vmatprep.subr.bf16.mxu0 %v992_v0 }
  0x5d   : > { %833 = vmatpush3.bf16.xpose.msra.mxu1 %v832_v61 }
  0x60   : > { %809 = vmatpush3.bf16.xpose.msk.msra.mxu0 %vm1168_vm1, %v807_v43  ;;  %v317_v43 = vadd.s32 4294967240, %v270_v4 }
  0x61   : > { %810 = vmatprep.subr.bf16.mxu0 %v992_v0 }
  0x62   : > { %v320_v54 = vsub.s32 %v317_v43, %v1304_v8 }
  0x68   : > { %813 = vmatpush3.bf16.xpose.msk.msra.mxu0 %vm1168_vm1, %v811_v50 }
  0x69   : > { %814 = vmatprep.subr.bf16.mxu0 %v992_v0 }
  0x70   : > { %817 = vmatpush3.bf16.xpose.msk.msra.mxu0 %vm1168_vm1, %v815_v56 }
  0x71   : > { %818 = vmatprep.subr.bf16.mxu0 %v992_v0 }
  0x78   : > { %821 = vmatpush3.bf16.xpose.msk.msra.mxu0 %vm1168_vm1, %v819_v62 }
  0xc8   : > { %v207_v0 = vpop.xlane.xlu0 %206 }
  0xc9   : > { %v213_v19 = vpop.xlane.xlu1 %212  ;;  %v229_v21 = vmul.f32 0.00390625, %v207_v0 }
  0xca   : > { %v231_v29 = vmul.f32 0.00390625, %v213_v19 }
  0xcb   : > { %v274_v35 = vrot.slane %v229_v21, %v273_v20 }
  0xcc   : > { %v210_v12 = vpop.xlane.xlu0 %209  ;;  %v286_v39 = vrot.slane %v231_v29, %v285_v28 }
  0xcd   : > { %v230_v32 = vmul.f32 0.00390625, %v210_v12  ;;  %v216_v33 = vpop.xlane.xlu1 %215 }
  0xce   : > { %v232_v34 = vmul.f32 0.00390625, %v216_v33 }
  0xcf   : > { %v279_v36 = vrot.slane %v230_v32, %v278_v22  ;;  %v524_v22 = vsub.s32 0, %v1304_v8 }
  0xd0   : > { %v293_v40 = vrot.slane %v232_v34, %v292_v30  ;;  %v219_v41 = vpop.xlane.xlu0 %218 }
  0xd1   : > { %v281_v44 = vsel %vm280_vm3, %v279_v36, %v274_v35  ;;  %v233_v45 = vmul.f32 0.00390625, %v219_v41  ;;  %v222_v46 = vpop.xlane.xlu1 %221 }
  0xd2   : > { %v288_v47 = vsel %vm287_vm4, %v286_v39, %v281_v44  ;;  %v234_v48 = vmul.f32 0.00390625, %v222_v46 }
  0xd3   : > { %v295_v49 = vsel %vm294_vm5, %v293_v40, %v288_v47  ;;  %v300_v50 = vrot.slane %v233_v45, %v299_v37 }
  0xd4   : > { %v307_v52 = vrot.slane %v234_v48, %v306_v42  ;;  %v225_v53 = vpop.xlane.xlu0 %224 }
  0xd5   : > { %v302_v55 = vsel %vm301_vm6, %v300_v50, %v295_v49  ;;  %v235_v56 = vmul.f32 0.00390625, %v225_v53  ;;  %v228_v57 = vpop.xlane.xlu1 %227 }
  0xd6   : > { %v236_v58 = vmul.f32 0.00390625, %v228_v57  ;;  %v309_v60 = vsel %vm308_vm7, %v307_v52, %v302_v55 }
  0xd7   : > { %v314_v59 = vrot.slane %v235_v56, %v313_v51 }
  0xd8   : > { %v321_v61 = vrot.slane %v236_v58, %v320_v54 }
  0xd9   : > { %v316_v62 = vsel %vm315_vm8, %v314_v59, %v309_v60 }
  0xda   : > { %v323_v63 = vsel %vm322_vm9, %v321_v61, %v316_v62 }
  0xdb   : > { %769 = vmatmul.mubr.msk.f32.vlgmr.msra.gmra.mrb[0].mxu0 %vm324_vm0, %v323_v63 }
 0x1ae   : > { %v441_v4 = vpop.f32.mrb[0].mxu0 }
 0x1af   : > { %v445_v11 = vmax.f32 %v441_v4, 0.0  ;;  %v770_v0 = vpop.f32.mrb[1].mxu0 }
 0x1b1   : > { %788 = vmatmul.mubr.f32.vlgmr.msra.gmra.mrb[0].mxu1 %v445_v11 }
 0x284   : > { %v512_v13 = vpop.f32.mrb[0].mxu1 }
 0x285   : > { %v702_v18 = vmul.f32 -1.442695, %v512_v13  ;;  %v789_v19 = vpop.f32.mrb[1].mxu1 }
 0x287   : > { %887 = vpow2.f32 %v702_v18 }
 0x291   : > { %v888_v20 = vpop.eup %887 }
 0x292   : > { %v519_v21 = vadd.f32 1.0, %v888_v20 }
 0x294   : > { %889 = vrcp.f32 %v519_v21 }
 0x29e   : > { %v890_v27 = vpop.eup %889 }
 0x29f   : > { %v525_v28 = vrot.slane %v890_v27, %v524_v22 }
 0x2a1   : > { %531 = vbcast.lane.b32.xlu1 %v525_v28, 264  ;;  %527 = vbcast.lane.b32.xlu0 %v525_v28, 256 }
 0x2a5   : > { %535 = vbcast.lane.b32.xlu1 %v525_v28, 272  ;;  %543 = vbcast.lane.b32.xlu0 %v525_v28, 288 }
 0x2a9   : > { %539 = vbcast.lane.b32.xlu1 %v525_v28, 280  ;;  %551 = vbcast.lane.b32.xlu0 %v525_v28, 304 }
 0x2ad   : > { %547 = vbcast.lane.b32.xlu1 %v525_v28, 296 }
 0x2b1   : > { %555 = vbcast.lane.b32.xlu1 %v525_v28, 312 }
 0x313   : > { %v532_v29 = vpop.permute.xlu1 %531  ;;  %v528_v12 = vpop.permute.xlu0 %527 }
 0x314   : > { %v559_v30 = vmul.f32 %v532_v29, %v1151_v6  ;;  %v560_v31 = vmul.f32 %v532_v29, %v1154_v7  ;;  %v557_v32 = vmul.f32 %v528_v12, %v1137_v1  ;;  %v558_v8 = vmul.f32 %v528_v12, %v1140_v2 }
 0x316   : > { %575 = vst [vmem:[%s1323_s23 + $0x10] sm:$0xff] %v559_v30  ;;  %576 = vst [vmem:[%s1323_s23 + $0x18] sm:$0xff] %v560_v31 }
 0x317   : > { %573 = vst [vmem:[%s1323_s23] sm:$0xff] %v557_v32  ;;  %574 = vst [vmem:[%s1323_s23 + $0x8] sm:$0xff] %v558_v8  ;;  %v536_v6 = vpop.permute.xlu1 %535  ;;  %v544_v1 = vpop.permute.xlu0 %543 }
 0x318   : > { %v561_v2 = vmul.f32 %v536_v6, %v1143_v3  ;;  %v562_v7 = vmul.f32 %v536_v6, %v1148_v5  ;;  %v565_v33 = vmul.f32 %v544_v1, %v1175_v14  ;;  %v566_v34 = vmul.f32 %v544_v1, %v1178_v15 }
 0x31a   : > { %577 = vst [vmem:[%s1323_s23 + $0x20] sm:$0xff] %v561_v2  ;;  %578 = vst [vmem:[%s1323_s23 + $0x28] sm:$0xff] %v562_v7 }
 0x31b   : > { %581 = vst [vmem:[%s1323_s23 + $0x40] sm:$0xff] %v565_v33  ;;  %582 = vst [vmem:[%s1323_s23 + $0x48] sm:$0xff] %v566_v34  ;;  %v540_v35 = vpop.permute.xlu1 %539  ;;  %v552_v36 = vpop.permute.xlu0 %551 }
 0x31c   : > { %v563_v3 = vmul.f32 %v540_v35, %v1159_v9  ;;  %v564_v37 = vmul.f32 %v540_v35, %v1162_v10  ;;  %v569_v5 = vmul.f32 %v552_v36, %v1197_v23  ;;  %v570_v14 = vmul.f32 %v552_v36, %v1200_v24 }
 0x31e   : > { %579 = vst [vmem:[%s1323_s23 + $0x30] sm:$0xff] %v563_v3  ;;  %580 = vst [vmem:[%s1323_s23 + $0x38] sm:$0xff] %v564_v37 }
 0x31f   : > { %585 = vst [vmem:[%s1323_s23 + $0x60] sm:$0xff] %v569_v5  ;;  %586 = vst [vmem:[%s1323_s23 + $0x68] sm:$0xff] %v570_v14  ;;  %v548_v15 = vpop.permute.xlu1 %547 }
 0x320   : > { %v567_v38 = vmul.f32 %v548_v15, %v1181_v16  ;;  %v568_v39 = vmul.f32 %v548_v15, %v1184_v17 }
 0x322   : > { %583 = vst [vmem:[%s1323_s23 + $0x50] sm:$0xff] %v567_v38  ;;  %584 = vst [vmem:[%s1323_s23 + $0x58] sm:$0xff] %v568_v39 }
 0x323   : > { %v556_v9 = vpop.permute.xlu1 %555 }
 0x324   : > { %v571_v10 = vmul.f32 %v556_v9, %v1203_v25  ;;  %v572_v16 = vmul.f32 %v556_v9, %v1208_v26 }
 0x326   : > { %587 = vst [vmem:[%s1323_s23 + $0x70] sm:$0xff] %v571_v10  ;;  %588 = vst [vmem:[%s1323_s23 + $0x78] sm:$0xff] %v572_v16 }
 0x327   : > { %934 = shalt.err (!%p931_p2)
}
 0x328   : > { %s935_s26 = scalar_lea.hbm %s1354_s8, 2048  ;;  %s939_s29 = scalar_lea.hbm %s1407_s3, 4096 }
 0x329   : > { %p936_p4 = scmp.ne.s32.totalorder %s1354_s8, %s935_s26  ;;  %p940_p9 = scmp.lt.u32.totalorder %s1354_s8, %s1407_s3 }
 0x32a   : > { %p941_p1 = scmp.lt.u32.totalorder %s939_s29, %s935_s26  ;;  %p943_p6 = scmp.lt.u32.totalorder %s935_s26, %s1354_s8 }
 0x32b   : > { %p937_p5 = pnand %p936_p4, %p1416_p11 }
 0x32c   : > { %p942_p3 = por %p941_p1, %p940_p9 }
 0x32d   : > { %p938_p7 = pneg %p937_p5 }
 0x32e   : > { %p944_p12 = por %p943_p6, %p942_p3 }
 0x330   : > { %p945_p13 = pnand %p944_p12, %p938_p7 }
 0x332   : > { %948 = shalt.err (!%p945_p13)
}
 0x333   : > { %s996_s11 = smov 256   ;;  %s997_s23 = smov 16  }
 0x334   : > { %836 = dma.vmem_to_hbm [thread:$0]  (%p1416_p11), %s1356_s4, 2048, %s1354_s8, %s590_s16, %s996_s11, %s996_s11, %s997_s23  }
 0x335 PF: > { %s618_s9 = sand.u32 1, %s975_s12   ;;  %p1417_p8 = scmp.ne.s32.totalorder %s1412_s25, 0 }
 0x336   : > { %p1418_p10 = scmp.ge.s32.totalorder %s987_s15, 2  ;;  %s619_s6 = scalar_lea.sflag [#allocation4], %s618_s9 }
 0x338   : > { %p843_p0 = pnand %p1418_p10, %p1417_p8 }
 0x33a   : > { %970 = dma.done.wait (!%p843_p0), %s619_s6, 2048  }
 0x33b   : > { %972 = vsyncadd (!%p843_p0), %s619_s6, 4294965248  ;;  %p16_p2 = scmp.ge.s32.totalorder %s1043_s18, 4   ;;  %s1419_s12 = smov %s979_s13 }
 0x33c   : > { %s1420_s13 = smov %s983_s14  ;;  %s1421_s14 = smov %s1055_s21 }
 0x33d   : > { %s1422_s15 = smov %s1043_s18  ;;  %18 = sbr.rel (!%p16_p2) target bundleno = 5 (0x5), region = 77 }
 0x344   :  { %624 = vsyncpa [#allocation3], 1 }
 0x345   :  { %626 = vsyncpa [#allocation3 + $0x1], 1 }
 0x346   :  { %627 = vsyncpa [#allocation4], 1 }
 0x347   :  { %629 = vsyncpa [#allocation4 + $0x1], 1 }

</bundles_post_ra>
